<compile_context>
chip_gen: v5e
topology: v5e:2x2
jax: 0.10.0
libtpu: 0.0.40
codegen_flags: <defaults>
</compile_context>

<pallas_src>
import jax
import jax.numpy as jnp
from jax.experimental import pallas as pl
from jax.experimental.pallas import tpu as pltpu


def _make_kernel(H, F_out, slab_rows, tile_b):
    pad_rows = slab_rows - (H + F_out)

    def kernel(xT_ref, w1T_ref, b1_ref, w2T_ref, b2_ref, slab_ref):
        # fc1 (transposed): (H, F_in) @ (F_in, tile_b) + (H, 1)
        hT = (
            jnp.dot(w1T_ref[...], xT_ref[...], preferred_element_type=jnp.float32)
            + b1_ref[...]
        )
        # relu
        aT = jnp.maximum(hT, 0.0)
        # fc2 (transposed): (F_out, H) @ (H, tile_b) + (F_out, 1)
        oT = (
            jnp.dot(w2T_ref[...], aT, preferred_element_type=jnp.float32)
            + b2_ref[...]
        )
        # Single aligned (slab_rows, tile_b) store: rows [0:H] = pre-ReLU
        # intermediate ("detach" branch), rows [H:H+F_out] = fc2 output,
        # remaining rows = padding to a full 8-sublane tile.
        rows = [hT, oT]
        if pad_rows:
            rows.append(jnp.zeros((pad_rows, tile_b), jnp.float32))
        slab_ref[...] = jnp.concatenate(rows, axis=0).astype(slab_ref.dtype)

    return kernel


def _choose_tiling(B, max_tile_b):
    """Pad B only to a multiple of 128 and balance it across grid tiles."""
    max_tile_b = max(128, (max_tile_b // 128) * 128)      # keep lane dim % 128
    padded128 = pl.cdiv(B, 128) * 128                     # minimal lane padding
    n_tiles = pl.cdiv(padded128, max_tile_b)
    tile_b = pl.cdiv(pl.cdiv(padded128, n_tiles), 128) * 128
    padded_b = n_tiles * tile_b                           # over-pad < 128/tile
    return tile_b, padded_b, n_tiles


def simplenet_forward_lanes(xT, w1, b1, w2, b2, *, max_tile_b=32768):
    """Lane-dense entry point (no wrapper-side layout plumbing).

    xT: (F_in, padded_b) with padded_b % 128 == 0 (batch on the lane axis).
    Returns slab (8, padded_b):
      rows [0:H]         pre-ReLU intermediate (x @ w1 + b1)^T
      rows [H:H+F_out]   (relu(...) @ w2 + b2)^T
      remaining rows     zero padding
    """
    F_in, padded_in_b = xT.shape
    H = w1.shape[1]
    F_out = w2.shape[1]
    slab_rows = pl.cdiv(H + F_out, 8) * 8

    tile_b, padded_b, grid_b = _choose_tiling(padded_in_b, max_tile_b)
    assert padded_b == padded_in_b, "xT batch must already be a multiple of 128"

    w1T = w1.T                      # (H, F_in)
    w2T = w2.T                      # (F_out, H)
    b1_2d = b1.reshape(H, 1)
    b2_2d = b2.reshape(F_out, 1)

    cost = pl.CostEstimate(
        flops=2 * padded_b * (F_in * H + H * F_out),
        transcendentals=0,
        bytes_accessed=4
        * (padded_b * (F_in + slab_rows) + F_in * H + H + H * F_out + F_out),
    )

    # Explicit scoped-VMEM budget: double-buffered x-tile + slab-tile plus
    # headroom, so wide tiles don't trip the v5e 16 MiB default.
    tile_bytes = 4 * tile_b * (F_in + slab_rows)
    vmem_limit = int(min(max(4 * tile_bytes + (2 << 20), 16 << 20), 96 << 20))

    slab = pl.pallas_call(
        _make_kernel(H, F_out, slab_rows, tile_b),
        out_shape=jax.ShapeDtypeStruct((slab_rows, padded_b), jnp.float32),
        grid=(grid_b,),
        in_specs=[
            pl.BlockSpec((F_in, tile_b), lambda i: (0, i)),      # xT batch tile
            pl.BlockSpec((H, F_in), lambda i: (0, 0)),           # w1T (resident)
            pl.BlockSpec((H, 1), lambda i: (0, 0)),              # b1
            pl.BlockSpec((F_out, H), lambda i: (0, 0)),          # w2T
            pl.BlockSpec((F_out, 1), lambda i: (0, 0)),          # b2
        ],
        out_specs=pl.BlockSpec((slab_rows, tile_b), lambda i: (0, i)),
        compiler_params=pltpu.CompilerParams(
            dimension_semantics=("parallel",),
            vmem_limit_bytes=vmem_limit,
        ),
        cost_estimate=cost,
    )(xT, w1T, b1_2d, w2T, b2_2d)
    return slab


def simplenet_forward(x, w1, b1, w2, b2, *, max_tile_b=32768):
    """PyTorch-layout compatibility wrapper.

    x: (B, F_in); w1: (F_in, H); b1: (H,); w2: (H, F_out); b2: (F_out,).
    Returns (out, intermediate) matching the PyTorch module:
      out          = relu(x @ w1 + b1) @ w2 + b2        (B, F_out)
      intermediate = stop_gradient(x @ w1 + b1)         (B, H)

    Note: the pad/transpose below is wrapper-side layout plumbing; lane-major
    callers should use simplenet_forward_lanes directly to avoid it.
    """
    B, F_in = x.shape
    H = w1.shape[1]
    F_out = w2.shape[1]

    if B == 0:
        return (jnp.zeros((0, F_out), x.dtype), jnp.zeros((0, H), x.dtype))

    _, padded_b, _ = _choose_tiling(B, max_tile_b)
    xT = jnp.pad(x, ((0, padded_b - B), (0, 0))).T           # (F_in, padded_b)

    slab = simplenet_forward_lanes(xT, w1, b1, w2, b2, max_tile_b=max_tile_b)

    inter = slab[0:H, 0:B].T                   # (B, H)  pre-ReLU intermediate
    out = slab[H:H + F_out, 0:B].T             # (B, F_out)

    # detach() semantics: block gradients through the intermediate output.
    inter = jax.lax.stop_gradient(inter)
    return out, inter


def init_params(key):
    # Mirror nn.Linear default init: U(-1/sqrt(fan_in), 1/sqrt(fan_in)).
    k1, k2, k3, k4 = jax.random.split(key, 4)
    bound1 = 1.0 / jnp.sqrt(10.0)
    bound2 = 1.0 / jnp.sqrt(5.0)
    w1 = jax.random.uniform(k1, (10, 5), jnp.float32, -bound1, bound1)
    b1 = jax.random.uniform(k2, (5,), jnp.float32, -bound1, bound1)
    w2 = jax.random.uniform(k3, (5, 2), jnp.float32, -bound2, bound2)
    b2 = jax.random.uniform(k4, (2,), jnp.float32, -bound2, bound2)
    return w1, b1, w2, b2


if __name__ == "__main__":
    key = jax.random.PRNGKey(0)
    k_x, k_p = jax.random.split(key)

    B = 8  # small batch (padded to one 128-lane tile internally)
    x = jax.random.normal(k_x, (B, 10), jnp.float32)
    w1, b1, w2, b2 = init_params(k_p)

    out, inter = simplenet_forward(x, w1, b1, w2, b2)
    jax.block_until_ready((out, inter))

    # reference check in plain JAX
    h_ref = x @ w1 + b1
    out_ref = jnp.maximum(h_ref, 0.0) @ w2 + b2
    assert out.shape == (B, 2) and inter.shape == (B, 5)
    assert jnp.allclose(inter, h_ref, atol=1e-5), "intermediate mismatch"
    assert jnp.allclose(out, out_ref, atol=1e-5), "output mismatch"

    print("KERNEL_OK")
</pallas_src>

<mosaic_0001>
module attributes {stable_mosaic.version = 11 : i64} {
  func.func @kernel(%arg0: i32, %arg1: memref<10x128xf32, #tpu.memory_space<vmem>>, %arg2: memref<5x10xf32, #tpu.memory_space<vmem>>, %arg3: memref<5x1xf32, #tpu.memory_space<vmem>>, %arg4: memref<2x5xf32, #tpu.memory_space<vmem>>, %arg5: memref<2x1xf32, #tpu.memory_space<vmem>>, %arg6: memref<8x128xf32, #tpu.memory_space<vmem>>) attributes {dimension_semantics = [#tpu.dimension_semantics<parallel>], iteration_bounds = array<i64: 1>, scalar_prefetch = 0 : i64, scratch_operands = 0 : i64, tpu.core_type = #tpu.core_type<tc>, window_params = [{transform_indices = @transform_0, window_bounds = array<i64: 10, 128>}, {pipeline_mode = #tpu.pipeline_mode<synchronous>, transform_indices = @transform_1, window_bounds = array<i64: 5, 10>}, {pipeline_mode = #tpu.pipeline_mode<synchronous>, transform_indices = @transform_2, window_bounds = array<i64: 5, 1>}, {pipeline_mode = #tpu.pipeline_mode<synchronous>, transform_indices = @transform_3, window_bounds = array<i64: 2, 5>}, {pipeline_mode = #tpu.pipeline_mode<synchronous>, transform_indices = @transform_4, window_bounds = array<i64: 2, 1>}, {transform_indices = @transform_5, window_bounds = array<i64: 8, 128>}]} {
    %c0 = arith.constant 0 : index
    %c0_0 = arith.constant 0 : index
    %0 = vector.load %arg2[%c0, %c0_0] : memref<5x10xf32, #tpu.memory_space<vmem>>, vector<5x10xf32>
    %c0_1 = arith.constant 0 : index
    %c0_2 = arith.constant 0 : index
    %1 = vector.load %arg1[%c0_1, %c0_2] : memref<10x128xf32, #tpu.memory_space<vmem>>, vector<10x128xf32>
    %cst = arith.constant dense<0.000000e+00> : vector<5x128xf32>
    %2 = tpu.matmul %0, %1, %cst {dimension_numbers = #tpu.dot_dimension_numbers<[1], [0], [0], [1], [0, 0, 1, 1], [], []>} : vector<5x10xf32>, vector<10x128xf32>, vector<5x128xf32> -> vector<5x128xf32>
    %c0_3 = arith.constant 0 : index
    %c0_4 = arith.constant 0 : index
    %3 = vector.load %arg3[%c0_3, %c0_4] : memref<5x1xf32, #tpu.memory_space<vmem>>, vector<5x1xf32>
    %4 = vector.broadcast %3 : vector<5x1xf32> to vector<5x128xf32>
    %5 = arith.addf %2, %4 : vector<5x128xf32>
    %cst_5 = arith.constant 0.000000e+00 : f32
    %6 = vector.broadcast %cst_5 : f32 to vector<5x128xf32>
    %7 = arith.maximumf %5, %6 : vector<5x128xf32>
    %c0_6 = arith.constant 0 : index
    %c0_7 = arith.constant 0 : index
    %8 = vector.load %arg4[%c0_6, %c0_7] : memref<2x5xf32, #tpu.memory_space<vmem>>, vector<2x5xf32>
    %cst_8 = arith.constant dense<0.000000e+00> : vector<2x128xf32>
    %9 = tpu.matmul %8, %7, %cst_8 {dimension_numbers = #tpu.dot_dimension_numbers<[1], [0], [0], [1], [0, 0, 1, 1], [], []>} : vector<2x5xf32>, vector<5x128xf32>, vector<2x128xf32> -> vector<2x128xf32>
    %c0_9 = arith.constant 0 : index
    %c0_10 = arith.constant 0 : index
    %10 = vector.load %arg5[%c0_9, %c0_10] : memref<2x1xf32, #tpu.memory_space<vmem>>, vector<2x1xf32>
    %11 = vector.broadcast %10 : vector<2x1xf32> to vector<2x128xf32>
    %12 = arith.addf %9, %11 : vector<2x128xf32>
    %cst_11 = arith.constant 0.000000e+00 : f32
    %13 = vector.broadcast %cst_11 : f32 to vector<1x128xf32>
    %14 = tpu.concatenate %5, %12, %13 in 0 : vector<5x128xf32>, vector<2x128xf32>, vector<1x128xf32> -> vector<8x128xf32>
    %c0_12 = arith.constant 0 : index
    %c0_13 = arith.constant 0 : index
    %15 = vector.load %arg6[%c0_12, %c0_13] : memref<8x128xf32, #tpu.memory_space<vmem>>, vector<8x128xf32>
    tpu.vector_store %arg6[%c0_12, %c0_13], %14 {strides = array<i32>} : memref<8x128xf32, #tpu.memory_space<vmem>>, vector<8x128xf32>,
    return
  }
  func.func @transform_0(%arg0: i32) -> (i32, i32) {
    %c0_i32 = arith.constant 0 : i32
    %c0_i32_0 = arith.constant 0 : i32
    return %c0_i32, %arg0 : i32, i32
  }
  func.func @transform_1(%arg0: i32) -> (i32, i32) {
    %c0_i32 = arith.constant 0 : i32
    %c0_i32_0 = arith.constant 0 : i32
    %c0_i32_1 = arith.constant 0 : i32
    return %c0_i32, %c0_i32_0 : i32, i32
  }
  func.func @transform_2(%arg0: i32) -> (i32, i32) {
    %c0_i32 = arith.constant 0 : i32
    %c0_i32_0 = arith.constant 0 : i32
    %c0_i32_1 = arith.constant 0 : i32
    return %c0_i32, %c0_i32_0 : i32, i32
  }
  func.func @transform_3(%arg0: i32) -> (i32, i32) {
    %c0_i32 = arith.constant 0 : i32
    %c0_i32_0 = arith.constant 0 : i32
    %c0_i32_1 = arith.constant 0 : i32
    return %c0_i32, %c0_i32_0 : i32, i32
  }
  func.func @transform_4(%arg0: i32) -> (i32, i32) {
    %c0_i32 = arith.constant 0 : i32
    %c0_i32_0 = arith.constant 0 : i32
    %c0_i32_1 = arith.constant 0 : i32
    return %c0_i32, %c0_i32_0 : i32, i32
  }
  func.func @transform_5(%arg0: i32) -> (i32, i32) {
    %c0_i32 = arith.constant 0 : i32
    %c0_i32_0 = arith.constant 0 : i32
    return %c0_i32, %arg0 : i32, i32
  }
}

</mosaic_0001>

<bundles_post_ra>
// kernel: tpu_custom_call.1
= control target key start
LH: loop header
LB: loop body
LE: loop exit
PB: predicated region body
PF: predicated region fallthrough
CT: control target
= control target key end

     0   :  { %10 = vsyncpa [#allocation3], 0  ;;  %s249_s0 = inlined_call_operand.hbm [shape: f32[10,128], index: 0, kind: input, shape index: {}]   ;;  %s250_s1 = inlined_call_operand.vmem [shape: f32[5,10], index: 1, kind: input, shape index: {}]   ;;  %s251_s2 = inlined_call_operand.vmem [shape: f32[5,1], index: 2, kind: input, shape index: {}]   ;;  %s252_s3 = inlined_call_operand.vmem [shape: f32[2,5], index: 3, kind: input, shape index: {}]   ;;  %s253_s4 = inlined_call_operand.vmem [shape: f32[2,1], index: 4, kind: input, shape index: {}]   ;;  %s254_s5 = inlined_call_operand.hbm [shape: f32[8,128], index: 5, kind: output, shape index: {}]  }
   0x1   :  { %11 = vsyncpa [#allocation4], 0  ;;  %s16_s20 = sshll.u32 %s249_s0, 4  ;;  %s196_s21 = smov [#allocation2]   ;;  %s17_s20 = int_to_ptr.hbm [resolvable:$true] %s16_s20 }
   0x2   :  { %s18_s22 = sshll.u32 %s196_s21, 4  ;;  %s197_s23 = smov 128   ;;  %s19_s22 = int_to_ptr.vmem [resolvable:$true] %s18_s22 }
   0x3   :  { %s198_s24 = smov 8  }
   0x4   :  { %24 = dma.hbm_to_vmem [thread:$0]  %s17_s20, 256, %s19_s22, [#allocation3], %s197_s23, %s197_s23, %s198_s24  }
   0x5   :  { %192 = dma.done.wait [#allocation3], 256  }
   0x6   :  { %193 = vsyncadd [#allocation3], 4294967040  ;;  %v199_v0 = vmov 0   ;;  %vm50_vm0 = vcmask 1041408   ;;  %v39_v1 = vld [vmem:[#allocation2 + $0x8] sm:$0x3] }
   0x7   :  { %143 = vset.pattern.permute.xlu0 %v199_v0  ;;  %v38_v2 = vld [vmem:[#allocation2] sm:$0xff]  ;;  %134 = vmatpush.msk.msra.mxu0 %vm50_vm0, %v39_v1  ;;  %vm46_vm1 = vcmask 80896   ;;  %vm86_vm2 = vcmask 1044480   ;;  %vm82_vm3 = vcmask 39936   ;;  %s124_s8 = sshll.u32 %s254_s5, 4  ;;  %vm114_vm4 = vcmask 1046528   ;;  %s125_s8 = int_to_ptr.hbm [resolvable:$true] %s124_s8 }
   0x8   :  { %v37_v3 = vld [vmem:[%s250_s1] sm:$0x1f] }
   0x9   :  { %v40_v4 = vld [vmem:[%s251_s2] sm:$0x1f]  ;;  %69 = vmatpush.msra.mxu0 %v38_v2  ;;  %s200_s2 = smov [#allocation5]  }
   0xa   :  { %43 = vperm.xlu0 %143, %v40_v4   ;;  %135 = vmatmul.msk.f32.vlgmr.msra.gmra.mxu0 %vm46_vm1, %v37_v3  ;;  %v76_v5 = vld [vmem:[%s253_s4] sm:$0x3]  ;;  %s122_s6 = sshll.u32 %s200_s2, 4  ;;  %s123_s6 = int_to_ptr.vmem [resolvable:$true] %s122_s6 }
   0xb   :  { %v75_v10 = vld [vmem:[%s252_s3] sm:$0x3] }
  0x12   :  { %79 = vperm.xlu0 %143, %v76_v5  }
  0x7c   :  { %v44_v6 = vpop.permute.xlu0 %43 }
  0x84   :  { %v80_v11 = vpop.permute.xlu0 %79 }
  0x87   :  { %v71_v7 = vpop.f32.mrf.mxu0 }
  0x88   :  { %v72_v8 = vadd.f32 %v71_v7, %v44_v6 }
  0x8a   :  { %v74_v9 = vmax.f32 %v72_v8, 0.0 }
  0x8c   :  { %136 = vmatpush.msk.msra.mxu1 %vm86_vm2, %v74_v9 }
  0x8d   :  { %137 = vmatmul.msk.f32.vlgmr.msra.gmra.mxu1 %vm82_vm3, %v75_v10 }
 0x10a   :  { %v107_v12 = vpop.f32.mrf.mxu1 }
 0x10b   :  { %v108_v13 = vadd.f32 %v107_v12, %v80_v11 }
 0x10d   :  { %v111_v14 = vrot.slane %v108_v13, 3 }
 0x10f   :  { %v113_v15 = vsel %vm86_vm2, %v72_v8, %v111_v14 }
 0x110   :  { %v115_v16 = vsel %vm114_vm4, %v113_v15, 0.0 }
 0x111   :  { %116 = vst [vmem:[#allocation5] sm:$0xff] %v115_v16 }
 0x112   :  { %127 = dma.vmem_to_hbm [thread:$0]  %s123_s6, 128, %s125_s8, [#allocation4]  }
 0x113   :  { %194 = dma.done.wait [#allocation4], 128  }
 0x114   :  { %195 = vsyncadd [#allocation4], 4294967168 }
 0x115   :  { %132 = vsyncpa [#allocation3], 1 }
 0x116   :  { %133 = vsyncpa [#allocation4], 1 }

</bundles_post_ra>
